<compile_context>
chip_gen: v5e
topology: v5e:2x2
jax: 0.10.0
libtpu: 0.0.40
codegen_flags: <defaults>
</compile_context>

<pallas_src>
import functools

import jax
import jax.numpy as jnp
from jax import lax
from jax.experimental import pallas as pl
from jax.experimental.pallas import tpu as pltpu

LANE = 128
MAX_TM = 1024        # rows per MSE tile: 6 inputs x 2 bufs x 512 KiB = 6 MiB VMEM
SUB_ROWS = 128       # rows per inner sub-step: bounds live vregs (~16/operand)
TEMPERATURE = 0.07
NEG_ALPHA = 1.6
RECON_WEIGHT = 1.0
POSE_WEIGHT = 1.0
NEG_FILL = -1e30     # pad value for unused logit lanes (never wins top-k)


# -----------------------------------------------------------------------------
# Kernel 1: fused sum-of-squared-differences for the 4 reconstruction MSEs.
# Inputs: 4 recon images + 2 target images, each viewed as (rows, 128).
# Output block (32, 128) = 4 pairs x (8, 128) vector accumulators, resident
# across the single 'arbitrary' grid axis; the tiny final cross-lane reduce
# happens in the JAX wrapper.
# -----------------------------------------------------------------------------
def _fused_sse_kernel(r0_ref, r1_ref, r2_ref, r3_ref, tn_ref, tf_ref, o_ref,
                      *, rows, tm, sub, ragged):
    c = pl.program_id(0)

    @pl.when(c == 0)
    def _():
        o_ref[...] = jnp.zeros_like(o_ref)

    pairs = ((r0_ref, tn_ref), (r1_ref, tf_ref),
             (r2_ref, tn_ref), (r3_ref, tf_ref))
    n_sub = tm // sub

    def body(s, carry):
        row0 = pl.multiple_of(s * sub, sub)
        if ragged:
            g = (c * tm + row0
                 + lax.broadcasted_iota(jnp.int32, (sub, LANE), 0))
            valid = g < rows
        for i, (r_ref, t_ref) in enumerate(pairs):
            # Load recon & target sub-blocks inside the loop: no hoisted
            # full-tile live values -> bounded vreg pressure, no spills.
            d = (r_ref[pl.ds(row0, sub), :].astype(jnp.float32)
                 - t_ref[pl.ds(row0, sub), :].astype(jnp.float32))
            d2 = d * d
            if ragged:
                # jnp.where (not multiply): Pallas edge-pad rows of the last
                # ragged block are unspecified (could be NaN/Inf).
                d2 = jnp.where(valid, d2, 0.0)
            part = d2.reshape(-1, 8, LANE).sum(axis=0)      # pure vreg-wise adds
            o_ref[i * 8:(i + 1) * 8, :] += part
        return carry

    lax.fori_loop(0, n_sub, body, 0, unroll=True)


def fused_recon_mse(recon_list, img_normal, img_flip):
    """Returns the 4 mean-squared-errors as a length-4 vector."""
    n = img_normal.size
    rows = -(-n // LANE)

    if rows <= SUB_ROWS:
        tm = max(8, ((rows + 7) // 8) * 8)
    else:
        tm = min(MAX_TM, (rows // SUB_ROWS) * SUB_ROWS)
    sub = min(SUB_ROWS, tm)
    chunks = pl.cdiv(rows, tm)
    ragged = (rows % tm) != 0

    def prep(x):
        flat = x.reshape(-1)
        rem = (-flat.shape[0]) % LANE
        if rem:
            # Only the sub-128-element lane remainder is padded (rare for real
            # C*H*W); no full tile-multiple HBM copy of the image streams.
            flat = jnp.pad(flat, (0, rem))
        return flat.reshape(-1, LANE)

    args = [prep(r) for r in recon_list] + [prep(img_normal), prep(img_flip)]

    kernel = functools.partial(_fused_sse_kernel, rows=rows, tm=tm, sub=sub,
                               ragged=ragged)
    in_spec = pl.BlockSpec((tm, LANE), lambda c: (c, 0))
    out = pl.pallas_call(
        kernel,
        out_shape=jax.ShapeDtypeStruct((32, LANE), jnp.float32),
        grid=(chunks,),
        in_specs=[in_spec] * 6,
        out_specs=pl.BlockSpec((32, LANE), lambda c: (0, 0)),
        compiler_params=pltpu.CompilerParams(
            dimension_semantics=("arbitrary",)),
    )(*args)
    # TODO(synk): could fold this 16 KiB reduce into the last grid step (SMEM
    # scalar output) to drop one tiny XLA dispatch; low priority.
    ssd = out.reshape(4, 8, LANE).sum(axis=(1, 2))          # (4,) tiny reduce
    return ssd / n


# -----------------------------------------------------------------------------
# Kernel 2: fused feature kernel — 2 DSN diff losses + InfoNCE pose logits +
# cross-entropy pose loss in one dispatch.  The unique (b/2, n, d) negative
# bank serves both the q and the k rows (M=2 batched bf16 dot on the MXU);
# logits output is a single lane-dense store with -1e30 pad columns.
# -----------------------------------------------------------------------------
def _feature_kernel(ne_ref, np_ref, fe_ref, fp_ref, feat_ref, neg_ref,
                    logits_ref, diff_ref, pose_ref,
                    *, half, n_neg, pad_cols, temperature):
    # --- DSN soft-orthogonality diff losses (eps = 1e-6, matching DSN) -------
    def soft_ortho(a_ref, b_ref):
        a = a_ref[...].astype(jnp.float32)
        b = b_ref[...].astype(jnp.float32)
        an = a * pl.reciprocal(
            jnp.sqrt(jnp.sum(a * a, axis=1, keepdims=True)) + 1e-6, approx=True)
        bn = b * pl.reciprocal(
            jnp.sqrt(jnp.sum(b * b, axis=1, keepdims=True)) + 1e-6, approx=True)
        corr = lax.dot_general(an.astype(jnp.bfloat16), bn.astype(jnp.bfloat16),
                               (((0,), (0,)), ((), ())),
                               preferred_element_type=jnp.float32)
        return jnp.mean(corr * corr)

    diff_ref[0, 0] = soft_ortho(ne_ref, np_ref) + soft_ortho(fe_ref, fp_ref)

    # --- InfoNCE pose logits (F.normalize, eps = 1e-12) ----------------------
    f = feat_ref[...].astype(jnp.float32)                        # (b, d)
    f = f * lax.rsqrt(jnp.maximum(
        jnp.sum(f * f, axis=1, keepdims=True), 1e-24))
    b, d = f.shape
    f2 = f.reshape(2, half, d)                                   # [q ; k]
    pos_half = jnp.sum(f2[0] * f2[1], axis=1, keepdims=True)     # (b/2, 1)
    pos = jnp.concatenate([pos_half, pos_half], axis=0)          # (b, 1); q·k == k·q

    neg = neg_ref[...].astype(jnp.float32)                       # (b/2, n, d)
    neg = neg * lax.rsqrt(jnp.maximum(
        jnp.sum(neg * neg, axis=2, keepdims=True), 1e-24))
    # One unique bank per group feeds both its q and k row (M=2 on the MXU).
    neg_logits = jnp.einsum(
        'tgd,gnd->tgn', f2.astype(jnp.bfloat16), neg.astype(jnp.bfloat16),
        preferred_element_type=jnp.float32).reshape(b, n_neg)
    # TODO(synk): for production-sized negative banks, tile the n axis with a
    # grid ('arbitrary') + online log-sum-exp so the bank is never fully
    # VMEM-resident (v7x: 64 MiB).

    inv_t = jnp.float32(1.0 / temperature)
    pos = pos * inv_t
    negl = neg_logits * inv_t

    # Lane-dense single store; pad columns hold NEG_FILL so the wrapper can
    # run top-k / accuracy directly on the padded tensor (no slice, no vst.msk).
    parts = [pos, negl]
    if pad_cols:
        parts.append(jnp.full((b, pad_cols), NEG_FILL, jnp.float32))
    logits_ref[...] = jnp.concatenate(parts, axis=1)

    # cross entropy with labels == 0 (the positive is column 0)
    m = jnp.maximum(jnp.max(negl, axis=1, keepdims=True), pos)
    lse = m + jnp.log(jnp.exp(pos - m) +
                      jnp.sum(jnp.exp(negl - m), axis=1, keepdims=True))
    pose_ref[0, 0] = jnp.mean(lse - pos)


def feature_losses(normal_exp_fea, normal_pose_fea, flip_exp_fea, flip_pose_fea,
                   pose_fea_fc, neg_bank):
    b, _ = pose_fea_fc.shape
    n = neg_bank.shape[1]
    lcols = -(-(1 + n) // LANE) * LANE
    pad_cols = lcols - (1 + n)
    kernel = functools.partial(_feature_kernel, half=b // 2, n_neg=n,
                               pad_cols=pad_cols, temperature=TEMPERATURE)
    logits_pad, d_loss, pose_loss = pl.pallas_call(
        kernel,
        out_shape=(jax.ShapeDtypeStruct((b, lcols), jnp.float32),
                   jax.ShapeDtypeStruct((1, 1), jnp.float32),
                   jax.ShapeDtypeStruct((1, 1), jnp.float32)),
        in_specs=[pl.BlockSpec(memory_space=pltpu.MemorySpace.VMEM)] * 6,
        out_specs=(pl.BlockSpec(memory_space=pltpu.MemorySpace.VMEM),
                   pl.BlockSpec(memory_space=pltpu.MemorySpace.SMEM),
                   pl.BlockSpec(memory_space=pltpu.MemorySpace.SMEM)),
    )(normal_exp_fea, normal_pose_fea, flip_exp_fea, flip_pose_fea,
      pose_fea_fc, neg_bank)
    return logits_pad, d_loss[0, 0], pose_loss[0, 0]


# -----------------------------------------------------------------------------
# Plain-JAX glue
# -----------------------------------------------------------------------------
def accuracy(logits, labels, topk=(1, 5)):
    res = []
    for k in topk:
        _, idx = jax.lax.top_k(logits, k)
        correct = jnp.any(idx == labels[:, None], axis=1)
        res.append(jnp.mean(correct.astype(jnp.float32)) * 100.0)
    return res


def pcl_loss_forward(img_normal, img_flip, normal_exp_fea, normal_pose_fea,
                     flip_exp_fea, flip_pose_fea,
                     recon_normal_exp_flip_pose_img, recon_flip_exp_normal_pose_img,
                     recon_normal_exp_normal_pose_img, recon_flip_exp_flip_pose_img,
                     pose_fea_fc, pose_neg_fea_fc, rng_key):
    # --- 4 reconstruction MSE losses, fused into one kernel ------------------
    mses = fused_recon_mse(
        [recon_flip_exp_normal_pose_img,     # vs img_normal
         recon_normal_exp_flip_pose_img,     # vs img_flip
         recon_normal_exp_normal_pose_img,   # vs img_normal
         recon_flip_exp_flip_pose_img],      # vs img_flip
        img_normal, img_flip)
    recon_normal_loss = mses[0]
    recon_flip_loss = mses[1]
    recon_orin_loss = mses[2]
    recon_flip_ori_loss = mses[3]
    loss_pfe = (recon_normal_loss + recon_flip_loss +
                recon_orin_loss + recon_flip_ori_loss)

    # --- neg_inter_info_nce_loss_pose preamble (random mixing) ---------------
    # TODO(synk): np.random.beta / torch.randperm are host-side RNG in the
    # reference; reproduced with jax.random (will not bit-match the reference).
    b, dim = pose_fea_fc.shape
    groups = b // 2
    neg_t = pose_neg_fea_fc.reshape(groups, -1, dim)        # chunk(b//2) + stack
    k_beta, k_perm = jax.random.split(rng_key)
    neg_mask = jax.random.beta(
        k_beta, NEG_ALPHA, NEG_ALPHA,
        (neg_t.shape[0], neg_t.shape[1])).astype(jnp.float32)[..., None]
    perm = jax.random.permutation(k_perm, neg_t.shape[1])
    neg_t = neg_t * neg_mask + (1.0 - neg_mask) * neg_t[:, perm]
    # NOTE: no .repeat(2,1,1) duplication — the kernel reuses each group's
    # bank for both its q and k row (same pairing as the reference).

    # --- fused diff + InfoNCE kernel -----------------------------------------
    pose_logits, d_loss, pose_loss = feature_losses(
        normal_exp_fea, normal_pose_fea, flip_exp_fea, flip_pose_fea,
        pose_fea_fc, neg_t)
    pose_labels = jnp.zeros((pose_logits.shape[0],), dtype=jnp.int32)
    # Padded lanes hold -1e30 -> never in top-k; accuracy matches the unpadded
    # logits of the reference.
    pose_acc1, pose_acc5 = accuracy(pose_logits, pose_labels, (1, 5))

    loss = d_loss + RECON_WEIGHT * loss_pfe + pose_loss * POSE_WEIGHT

    log_dic = {
        'diff_loss': d_loss,
        'recon_normal_loss': recon_normal_loss,
        'recon_flip_loss': recon_flip_loss,
        'recon_orin_loss': recon_orin_loss,
        'recon_flip_orin_loss': recon_flip_ori_loss,
        'pose_acc1': pose_acc1,
        'pose_acc5': pose_acc5,
        'pose_loss': pose_loss,
        'Total_loss': loss,
        'loss': loss,
    }
    return loss, log_dic


if __name__ == "__main__":
    key = jax.random.PRNGKey(0)
    ks = jax.random.split(key, 14)

    B, C, H, W = 8, 3, 16, 16   # images: NCHW
    D = 32                      # feature dim
    N_NEG_PER = 8               # negatives per group -> pose_neg rows = (B//2)*8

    img_normal = jax.random.normal(ks[0], (B, C, H, W), jnp.float32)
    img_flip = jax.random.normal(ks[1], (B, C, H, W), jnp.float32)
    normal_exp_fea = jax.random.normal(ks[2], (B, D), jnp.float32)
    normal_pose_fea = jax.random.normal(ks[3], (B, D), jnp.float32)
    flip_exp_fea = jax.random.normal(ks[4], (B, D), jnp.float32)
    flip_pose_fea = jax.random.normal(ks[5], (B, D), jnp.float32)
    recon_normal_exp_flip_pose_img = jax.random.normal(ks[6], (B, C, H, W), jnp.float32)
    recon_flip_exp_normal_pose_img = jax.random.normal(ks[7], (B, C, H, W), jnp.float32)
    recon_normal_exp_normal_pose_img = jax.random.normal(ks[8], (B, C, H, W), jnp.float32)
    recon_flip_exp_flip_pose_img = jax.random.normal(ks[9], (B, C, H, W), jnp.float32)
    pose_fea_fc = jax.random.normal(ks[10], (B, D), jnp.float32)
    pose_neg_fea_fc = jax.random.normal(ks[11], ((B // 2) * N_NEG_PER, D), jnp.float32)

    loss, log_dic = pcl_loss_forward(
        img_normal, img_flip, normal_exp_fea, normal_pose_fea,
        flip_exp_fea, flip_pose_fea,
        recon_normal_exp_flip_pose_img, recon_flip_exp_normal_pose_img,
        recon_normal_exp_normal_pose_img, recon_flip_exp_flip_pose_img,
        pose_fea_fc, pose_neg_fea_fc, rng_key=ks[12])

    jax.block_until_ready(loss)
    jax.block_until_ready(log_dic['pose_acc1'])
    print("KERNEL_OK")
</pallas_src>

<mosaic_0001>
module attributes {stable_mosaic.version = 11 : i64} {
  func.func @_fused_sse_kernel(%arg0: i32, %arg1: memref<48x128xf32, #tpu.memory_space<vmem>>, %arg2: memref<48x128xf32, #tpu.memory_space<vmem>>, %arg3: memref<48x128xf32, #tpu.memory_space<vmem>>, %arg4: memref<48x128xf32, #tpu.memory_space<vmem>>, %arg5: memref<48x128xf32, #tpu.memory_space<vmem>>, %arg6: memref<48x128xf32, #tpu.memory_space<vmem>>, %arg7: memref<32x128xf32, #tpu.memory_space<vmem>>) attributes {dimension_semantics = [#tpu.dimension_semantics<arbitrary>], iteration_bounds = array<i64: 1>, scalar_prefetch = 0 : i64, scratch_operands = 0 : i64, tpu.core_type = #tpu.core_type<tc>, window_params = [{transform_indices = @transform_0, window_bounds = array<i64: 48, 128>}, {transform_indices = @transform_1, window_bounds = array<i64: 48, 128>}, {transform_indices = @transform_2, window_bounds = array<i64: 48, 128>}, {transform_indices = @transform_3, window_bounds = array<i64: 48, 128>}, {transform_indices = @transform_4, window_bounds = array<i64: 48, 128>}, {transform_indices = @transform_5, window_bounds = array<i64: 48, 128>}, {pipeline_mode = #tpu.pipeline_mode<synchronous>, transform_indices = @transform_6, window_bounds = array<i64: 32, 128>}]} {
    %c0_i32 = arith.constant 0 : i32
    %0 = arith.cmpi eq, %arg0, %c0_i32 : i32
    %1 = arith.extui %0 : i1 to i32
    %c0_i32_0 = arith.constant 0 : i32
    %2 = arith.cmpi ne, %1, %c0_i32_0 : i32
    scf.if %2 {
      %cst_25 = arith.constant 0.000000e+00 : f32
      %49 = vector.broadcast %cst_25 : f32 to vector<32x128xf32>
      %c0_26 = arith.constant 0 : index
      %c0_27 = arith.constant 0 : index
      %50 = vector.load %arg7[%c0_26, %c0_27] : memref<32x128xf32, #tpu.memory_space<vmem>>, vector<32x128xf32>
      tpu.vector_store %arg7[%c0_26, %c0_27], %49 {strides = array<i32>} : memref<32x128xf32, #tpu.memory_space<vmem>>, vector<32x128xf32>,
    } else {
    }
    %c0_i32_1 = arith.constant 0 : i32
    %c48_i32 = arith.constant 48 : i32
    %3 = arith.muli %c0_i32_1, %c48_i32 : i32
    %4 = tpu.assume_multiple %3, 48 : i32
    %5 = arith.index_cast %4 : i32 to index
    %c0 = arith.constant 0 : index
    %6 = vector.load %arg1[%5, %c0] : memref<48x128xf32, #tpu.memory_space<vmem>>, vector<48x128xf32>
    %7 = arith.index_cast %4 : i32 to index
    %c0_2 = arith.constant 0 : index
    %8 = vector.load %arg5[%7, %c0_2] : memref<48x128xf32, #tpu.memory_space<vmem>>, vector<48x128xf32>
    %9 = arith.subf %6, %8 : vector<48x128xf32>
    %10 = arith.mulf %9, %9 : vector<48x128xf32>
    %11 = vector.shape_cast %10 : vector<48x128xf32> to vector<6x8x128xf32>
    %cst = arith.constant dense<0.000000e+00> : vector<8x128xf32>
    %12 = vector.multi_reduction <add>, %11, %cst [0] : vector<6x8x128xf32> to vector<8x128xf32>
    %c0_3 = arith.constant 0 : index
    %c0_4 = arith.constant 0 : index
    %13 = vector.load %arg7[%c0_3, %c0_4] : memref<32x128xf32, #tpu.memory_space<vmem>>, vector<8x128xf32>
    %14 = arith.addf %13, %12 : vector<8x128xf32>
    %c0_5 = arith.constant 0 : index
    %c0_6 = arith.constant 0 : index
    %15 = vector.load %arg7[%c0_5, %c0_6] : memref<32x128xf32, #tpu.memory_space<vmem>>, vector<8x128xf32>
    tpu.vector_store %arg7[%c0_5, %c0_6], %14 {strides = array<i32>} : memref<32x128xf32, #tpu.memory_space<vmem>>, vector<8x128xf32>,
    %16 = arith.index_cast %4 : i32 to index
    %c0_7 = arith.constant 0 : index
    %17 = vector.load %arg2[%16, %c0_7] : memref<48x128xf32, #tpu.memory_space<vmem>>, vector<48x128xf32>
    %18 = arith.index_cast %4 : i32 to index
    %c0_8 = arith.constant 0 : index
    %19 = vector.load %arg6[%18, %c0_8] : memref<48x128xf32, #tpu.memory_space<vmem>>, vector<48x128xf32>
    %20 = arith.subf %17, %19 : vector<48x128xf32>
    %21 = arith.mulf %20, %20 : vector<48x128xf32>
    %22 = vector.shape_cast %21 : vector<48x128xf32> to vector<6x8x128xf32>
    %cst_9 = arith.constant dense<0.000000e+00> : vector<8x128xf32>
    %23 = vector.multi_reduction <add>, %22, %cst_9 [0] : vector<6x8x128xf32> to vector<8x128xf32>
    %c8 = arith.constant 8 : index
    %c0_10 = arith.constant 0 : index
    %24 = vector.load %arg7[%c8, %c0_10] : memref<32x128xf32, #tpu.memory_space<vmem>>, vector<8x128xf32>
    %25 = arith.addf %24, %23 : vector<8x128xf32>
    %c8_11 = arith.constant 8 : index
    %c0_12 = arith.constant 0 : index
    %26 = vector.load %arg7[%c8_11, %c0_12] : memref<32x128xf32, #tpu.memory_space<vmem>>, vector<8x128xf32>
    tpu.vector_store %arg7[%c8_11, %c0_12], %25 {strides = array<i32>} : memref<32x128xf32, #tpu.memory_space<vmem>>, vector<8x128xf32>,
    %27 = arith.index_cast %4 : i32 to index
    %c0_13 = arith.constant 0 : index
    %28 = vector.load %arg3[%27, %c0_13] : memref<48x128xf32, #tpu.memory_space<vmem>>, vector<48x128xf32>
    %29 = arith.index_cast %4 : i32 to index
    %c0_14 = arith.constant 0 : index
    %30 = vector.load %arg5[%29, %c0_14] : memref<48x128xf32, #tpu.memory_space<vmem>>, vector<48x128xf32>
    %31 = arith.subf %28, %30 : vector<48x128xf32>
    %32 = arith.mulf %31, %31 : vector<48x128xf32>
    %33 = vector.shape_cast %32 : vector<48x128xf32> to vector<6x8x128xf32>
    %cst_15 = arith.constant dense<0.000000e+00> : vector<8x128xf32>
    %34 = vector.multi_reduction <add>, %33, %cst_15 [0] : vector<6x8x128xf32> to vector<8x128xf32>
    %c16 = arith.constant 16 : index
    %c0_16 = arith.constant 0 : index
    %35 = vector.load %arg7[%c16, %c0_16] : memref<32x128xf32, #tpu.memory_space<vmem>>, vector<8x128xf32>
    %36 = arith.addf %35, %34 : vector<8x128xf32>
    %c16_17 = arith.constant 16 : index
    %c0_18 = arith.constant 0 : index
    %37 = vector.load %arg7[%c16_17, %c0_18] : memref<32x128xf32, #tpu.memory_space<vmem>>, vector<8x128xf32>
    tpu.vector_store %arg7[%c16_17, %c0_18], %36 {strides = array<i32>} : memref<32x128xf32, #tpu.memory_space<vmem>>, vector<8x128xf32>,
    %38 = arith.index_cast %4 : i32 to index
    %c0_19 = arith.constant 0 : index
    %39 = vector.load %arg4[%38, %c0_19] : memref<48x128xf32, #tpu.memory_space<vmem>>, vector<48x128xf32>
    %40 = arith.index_cast %4 : i32 to index
    %c0_20 = arith.constant 0 : index
    %41 = vector.load %arg6[%40, %c0_20] : memref<48x128xf32, #tpu.memory_space<vmem>>, vector<48x128xf32>
    %42 = arith.subf %39, %41 : vector<48x128xf32>
    %43 = arith.mulf %42, %42 : vector<48x128xf32>
    %44 = vector.shape_cast %43 : vector<48x128xf32> to vector<6x8x128xf32>
    %cst_21 = arith.constant dense<0.000000e+00> : vector<8x128xf32>
    %45 = vector.multi_reduction <add>, %44, %cst_21 [0] : vector<6x8x128xf32> to vector<8x128xf32>
    %c24 = arith.constant 24 : index
    %c0_22 = arith.constant 0 : index
    %46 = vector.load %arg7[%c24, %c0_22] : memref<32x128xf32, #tpu.memory_space<vmem>>, vector<8x128xf32>
    %47 = arith.addf %46, %45 : vector<8x128xf32>
    %c24_23 = arith.constant 24 : index
    %c0_24 = arith.constant 0 : index
    %48 = vector.load %arg7[%c24_23, %c0_24] : memref<32x128xf32, #tpu.memory_space<vmem>>, vector<8x128xf32>
    tpu.vector_store %arg7[%c24_23, %c0_24], %47 {strides = array<i32>} : memref<32x128xf32, #tpu.memory_space<vmem>>, vector<8x128xf32>,
    %c1_i32 = arith.constant 1 : i32
    return
  }
  func.func @transform_0(%arg0: i32) -> (i32, i32) {
    %c0_i32 = arith.constant 0 : i32
    %c0_i32_0 = arith.constant 0 : i32
    return %arg0, %c0_i32 : i32, i32
  }
  func.func @transform_1(%arg0: i32) -> (i32, i32) {
    %c0_i32 = arith.constant 0 : i32
    %c0_i32_0 = arith.constant 0 : i32
    return %arg0, %c0_i32 : i32, i32
  }
  func.func @transform_2(%arg0: i32) -> (i32, i32) {
    %c0_i32 = arith.constant 0 : i32
    %c0_i32_0 = arith.constant 0 : i32
    return %arg0, %c0_i32 : i32, i32
  }
  func.func @transform_3(%arg0: i32) -> (i32, i32) {
    %c0_i32 = arith.constant 0 : i32
    %c0_i32_0 = arith.constant 0 : i32
    return %arg0, %c0_i32 : i32, i32
  }
  func.func @transform_4(%arg0: i32) -> (i32, i32) {
    %c0_i32 = arith.constant 0 : i32
    %c0_i32_0 = arith.constant 0 : i32
    return %arg0, %c0_i32 : i32, i32
  }
  func.func @transform_5(%arg0: i32) -> (i32, i32) {
    %c0_i32 = arith.constant 0 : i32
    %c0_i32_0 = arith.constant 0 : i32
    return %arg0, %c0_i32 : i32, i32
  }
  func.func @transform_6(%arg0: i32) -> (i32, i32) {
    %c0_i32 = arith.constant 0 : i32
    %c0_i32_0 = arith.constant 0 : i32
    %c0_i32_1 = arith.constant 0 : i32
    return %c0_i32, %c0_i32_0 : i32, i32
  }
}

</mosaic_0001>

<bundles_post_ra>
// kernel: tpu_custom_call.1
= control target key start
LH: loop header
LB: loop body
LE: loop exit
PB: predicated region body
PF: predicated region fallthrough
CT: control target
= control target key end

     0   :  { %11 = vsyncpa [#allocation3], 0  ;;  %s550_s0 = inlined_call_operand.hbm [shape: f32[48,128], index: 0, kind: input, shape index: {}]   ;;  %s551_s1 = inlined_call_operand.hbm [shape: f32[48,128], index: 1, kind: input, shape index: {}]   ;;  %s552_s2 = inlined_call_operand.hbm [shape: f32[48,128], index: 2, kind: input, shape index: {}]   ;;  %s553_s3 = inlined_call_operand.hbm [shape: f32[48,128], index: 3, kind: input, shape index: {}]   ;;  %s554_s4 = inlined_call_operand.hbm [shape: f32[48,128], index: 4, kind: input, shape index: {}]   ;;  %s555_s5 = inlined_call_operand.hbm [shape: f32[48,128], index: 5, kind: input, shape index: {}]   ;;  %s556_s6 = inlined_call_operand.hbm [shape: f32[32,128], index: 6, kind: output, shape index: {}]  }
   0x1   :  { %12 = vsyncpa [#allocation6], 0 }
   0x2   :  { %13 = vsyncpa [#allocation9], 0 }
   0x3   :  { %14 = vsyncpa [#allocation12], 0 }
   0x4   :  { %15 = vsyncpa [#allocation4], 0  ;;  %s33_s23 = sshll.u32 %s551_s1, 4  ;;  %s464_s24 = smov [#allocation5]   ;;  %s34_s23 = int_to_ptr.hbm [resolvable:$true] %s33_s23 }
   0x5   :  { %s35_s25 = sshll.u32 %s464_s24, 4  ;;  %s59_s28 = sshll.u32 %s553_s3, 4  ;;  %s36_s25 = int_to_ptr.vmem [resolvable:$true] %s35_s25  ;;  %s60_s28 = int_to_ptr.hbm [resolvable:$true] %s59_s28 }
   0x6   :  { %s465_s29 = smov 128   ;;  %s466_s30 = smov 8  }
   0x7   :  { %41 = dma.hbm_to_vmem [thread:$0]  %s34_s23, 768, %s36_s25, [#allocation6], %s465_s29, %s465_s29, %s466_s30  }
   0x8   :  { %s467_s7 = smov [#allocation8]   ;;  %s20_s1 = sshll.u32 %s550_s0, 4  ;;  %s21_s1 = int_to_ptr.hbm [resolvable:$true] %s20_s1 }
   0x9   :  { %s61_s8 = sshll.u32 %s467_s7, 4  ;;  %s46_s12 = sshll.u32 %s552_s2, 4  ;;  %s62_s8 = int_to_ptr.vmem [resolvable:$true] %s61_s8  ;;  %s47_s12 = int_to_ptr.hbm [resolvable:$true] %s46_s12 }
   0xa   :  { %67 = dma.hbm_to_vmem [thread:$0]  %s60_s28, 768, %s62_s8, [#allocation9], %s465_s29, %s465_s29, %s466_s30  }
   0xb   :  { %s468_s13 = smov [#allocation2]   ;;  %s469_s15 = smov [#allocation7]  }
   0xc   :  { %s22_s14 = sshll.u32 %s468_s13, 4  ;;  %s48_s0 = sshll.u32 %s469_s15, 4  ;;  %s23_s14 = int_to_ptr.vmem [resolvable:$true] %s22_s14  ;;  %s49_s0 = int_to_ptr.vmem [resolvable:$true] %s48_s0 }
   0xd   :  { %28 = dma.hbm_to_vmem [thread:$0]  %s21_s1, 768, %s23_s14, [#allocation3], %s465_s29, %s465_s29, %s466_s30  }
   0xe   :  { %s72_s18 = sshll.u32 %s554_s4, 4  ;;  %s85_s20 = sshll.u32 %s555_s5, 4  ;;  %s73_s18 = int_to_ptr.hbm [resolvable:$true] %s72_s18  ;;  %s86_s20 = int_to_ptr.hbm [resolvable:$true] %s85_s20 }
   0xf   :  { %54 = dma.hbm_to_vmem [thread:$0]  %s47_s12, 768, %s49_s0, [#allocation6], %s465_s29, %s465_s29, %s466_s30  }
  0x10   :  { %s470_s21 = smov [#allocation10]   ;;  %s471_s23 = smov [#allocation11]  }
  0x11   :  { %s74_s22 = sshll.u32 %s470_s21, 4  ;;  %s87_s4 = sshll.u32 %s471_s23, 4  ;;  %s75_s22 = int_to_ptr.vmem [resolvable:$true] %s74_s22  ;;  %s88_s4 = int_to_ptr.vmem [resolvable:$true] %s87_s4 }
  0x12   :  { %80 = dma.hbm_to_vmem [thread:$0]  %s73_s18, 768, %s75_s22, [#allocation9], %s465_s29, %s465_s29, %s466_s30  }
  0x13   :  { %93 = dma.hbm_to_vmem [thread:$0]  %s86_s20, 768, %s88_s4, [#allocation12], %s465_s29, %s465_s29, %s466_s30  }
  0x14   :  { %454 = dma.done.wait [#allocation3], 768  }
  0x15   :  { %455 = vsyncadd [#allocation3], 4294966528 }
  0x16   :  { %456 = dma.done.wait [#allocation6], 1536  }
  0x17   :  { %457 = vsyncadd [#allocation6], 4294965760 }
  0x18   :  { %458 = dma.done.wait [#allocation9], 1536  }
  0x19   :  { %459 = vsyncadd [#allocation9], 4294965760 }
  0x1a   :  { %460 = dma.done.wait [#allocation12], 768  }
  0x1b   :  { %461 = vsyncadd [#allocation12], 4294966528  ;;  %v126_v0 = vld [vmem:[#allocation2] sm:$0xff]  ;;  %v127_v1 = vld [vmem:[#allocation2 + $0x8] sm:$0xff]  ;;  %s472_s5 = smov [#allocation13]   ;;  %s260_s27 = sshll.u32 %s556_s6, 4  ;;  %s261_s27 = int_to_ptr.hbm [resolvable:$true] %s260_s27 }
  0x1c   :  { %v128_v2 = vld [vmem:[#allocation2 + $0x10] sm:$0xff]  ;;  %v129_v3 = vld [vmem:[#allocation2 + $0x18] sm:$0xff]  ;;  %v130_v4 = vld [vmem:[#allocation2 + $0x20] sm:$0xff]  ;;  %s258_s24 = sshll.u32 %s472_s5, 4  ;;  %s259_s24 = int_to_ptr.vmem [resolvable:$true] %s258_s24 }
  0x1d   :  { %v131_v5 = vld [vmem:[#allocation2 + $0x28] sm:$0xff]  ;;  %v132_v6 = vld [vmem:[#allocation10] sm:$0xff]  ;;  %v134_v8 = vld [vmem:[#allocation10 + $0x10] sm:$0xff] }
  0x1e   :  { %v133_v7 = vld [vmem:[#allocation10 + $0x8] sm:$0xff]  ;;  %v135_v9 = vld [vmem:[#allocation10 + $0x18] sm:$0xff]  ;;  %v136_v10 = vld [vmem:[#allocation10 + $0x20] sm:$0xff]  ;;  %v138_v12 = vsub.f32 %v126_v0, %v132_v6  ;;  %v140_v14 = vsub.f32 %v128_v2, %v134_v8 }
  0x1f   :  { %v137_v11 = vld [vmem:[#allocation10 + $0x28] sm:$0xff]  ;;  %v139_v13 = vsub.f32 %v127_v1, %v133_v7  ;;  %v141_v15 = vsub.f32 %v129_v3, %v135_v9  ;;  %v142_v16 = vsub.f32 %v130_v4, %v136_v10  ;;  %v158_v17 = vld [vmem:[#allocation5] sm:$0xff]  ;;  %v159_v18 = vld [vmem:[#allocation5 + $0x8] sm:$0xff] }
  0x20   :  { %v160_v19 = vld [vmem:[#allocation5 + $0x10] sm:$0xff]  ;;  %v144_v20 = vmul.f32 %v138_v12, %v138_v12  ;;  %v146_v22 = vmul.f32 %v140_v14, %v140_v14  ;;  %v161_v23 = vld [vmem:[#allocation5 + $0x18] sm:$0xff]  ;;  %v162_v24 = vld [vmem:[#allocation5 + $0x20] sm:$0xff]  ;;  %v143_v26 = vsub.f32 %v131_v5, %v137_v11 }
  0x21   :  { %v145_v21 = vmul.f32 %v139_v13, %v139_v13  ;;  %v163_v25 = vld [vmem:[#allocation5 + $0x28] sm:$0xff]  ;;  %v147_v27 = vmul.f32 %v141_v15, %v141_v15  ;;  %v164_v28 = vld [vmem:[#allocation11] sm:$0xff]  ;;  %v166_v30 = vld [vmem:[#allocation11 + $0x10] sm:$0xff]  ;;  %v148_v38 = vmul.f32 %v142_v16, %v142_v16 }
  0x22   :  { %v165_v29 = vld [vmem:[#allocation11 + $0x8] sm:$0xff]  ;;  %v167_v32 = vld [vmem:[#allocation11 + $0x18] sm:$0xff]  ;;  %v168_v33 = vld [vmem:[#allocation11 + $0x20] sm:$0xff]  ;;  %v170_v35 = vsub.f32 %v158_v17, %v164_v28  ;;  %v172_v37 = vsub.f32 %v160_v19, %v166_v30  ;;  %v149_v50 = vmul.f32 %v143_v26, %v143_v26 }
  0x23   :  { %v150_v31 = vadd.f32 %v145_v21, %v144_v20  ;;  %v169_v34 = vld [vmem:[#allocation11 + $0x28] sm:$0xff]  ;;  %v171_v36 = vsub.f32 %v159_v18, %v165_v29  ;;  %v173_v39 = vsub.f32 %v161_v23, %v167_v32  ;;  %v174_v40 = vsub.f32 %v162_v24, %v168_v33  ;;  %v190_v41 = vld [vmem:[#allocation7] sm:$0xff]  ;;  %v191_v42 = vld [vmem:[#allocation7 + $0x8] sm:$0xff] }
  0x24   :  { %v192_v43 = vld [vmem:[#allocation7 + $0x10] sm:$0xff]  ;;  %v176_v45 = vmul.f32 %v170_v35, %v170_v35  ;;  %v178_v47 = vmul.f32 %v172_v37, %v172_v37  ;;  %v193_v48 = vld [vmem:[#allocation7 + $0x18] sm:$0xff]  ;;  %v194_v49 = vld [vmem:[#allocation7 + $0x20] sm:$0xff]  ;;  %v175_v51 = vsub.f32 %v163_v25, %v169_v34  ;;  %v202_v53 = vsub.f32 %v190_v41, %v132_v6 }
  0x25   :  { %v151_v44 = vadd.f32 %v150_v31, %v146_v22  ;;  %v177_v46 = vmul.f32 %v171_v36, %v171_v36  ;;  %v179_v52 = vmul.f32 %v173_v39, %v173_v39  ;;  %v195_v56 = vld [vmem:[#allocation7 + $0x28] sm:$0xff]  ;;  %v203_v57 = vsub.f32 %v191_v42, %v133_v7  ;;  %v222_v59 = vld [vmem:[#allocation8] sm:$0xff]  ;;  %v223_v0 = vld [vmem:[#allocation8 + $0x8] sm:$0xff] }
  0x26   :  { %v204_v58 = vsub.f32 %v192_v43, %v134_v8  ;;  %v180_v60 = vmul.f32 %v174_v40, %v174_v40  ;;  %v205_v61 = vsub.f32 %v193_v48, %v135_v9  ;;  %v206_v62 = vsub.f32 %v194_v49, %v136_v10  ;;  %v224_v5 = vld [vmem:[#allocation8 + $0x10] sm:$0xff]  ;;  %v225_v12 = vld [vmem:[#allocation8 + $0x18] sm:$0xff]  ;;  %v226_v8 = vld [vmem:[#allocation8 + $0x20] sm:$0xff] }
  0x27   :  { %v152_v54 = vadd.f32 %v151_v44, %v147_v27  ;;  %v182_v55 = vadd.f32 %v177_v46, %v176_v45  ;;  %v208_v63 = vmul.f32 %v202_v53, %v202_v53  ;;  %v209_v3 = vmul.f32 %v203_v57, %v203_v57  ;;  %v227_v22 = vld [vmem:[#allocation8 + $0x28] sm:$0xff] }
  0x28   :  { %v210_v4 = vmul.f32 %v204_v58, %v204_v58  ;;  %v181_v13 = vmul.f32 %v175_v51, %v175_v51  ;;  %v207_v14 = vsub.f32 %v195_v56, %v137_v11  ;;  %v211_v6 = vmul.f32 %v205_v61, %v205_v61 }
  0x29   :  { %v153_v1 = vadd.f32 %v152_v54, %v148_v38  ;;  %v183_v2 = vadd.f32 %v182_v55, %v178_v47  ;;  %v234_v15 = vsub.f32 %v222_v59, %v164_v28  ;;  %v214_v7 = vadd.f32 %v209_v3, %v208_v63 }
  0x2a   :  { %v235_v18 = vsub.f32 %v223_v0, %v165_v29  ;;  %v212_v19 = vmul.f32 %v206_v62, %v206_v62  ;;  %v236_v9 = vsub.f32 %v224_v5, %v166_v30  ;;  %v237_v10 = vsub.f32 %v225_v12, %v167_v32 }
  0x2b   :  { %v154_v16 = vadd.f32 %v153_v1, %v149_v50  ;;  %v184_v17 = vadd.f32 %v183_v2, %v179_v52  ;;  %v215_v21 = vadd.f32 %v214_v7, %v210_v4  ;;  %v240_v23 = vmul.f32 %v234_v15, %v234_v15 }
  0x2c   :  { %v238_v24 = vsub.f32 %v226_v8, %v168_v33  ;;  %v241_v25 = vmul.f32 %v235_v18, %v235_v18  ;;  %v242_v26 = vmul.f32 %v236_v9, %v236_v9  ;;  %v213_v11 = vmul.f32 %v207_v14, %v207_v14 }
  0x2d   :  { %v185_v20 = vadd.f32 %v184_v17, %v180_v60  ;;  %157 = vst [vmem:[#allocation13] sm:$0xff] %v154_v16  ;;  %v216_v31 = vadd.f32 %v215_v21, %v211_v6  ;;  %v239_v28 = vsub.f32 %v227_v22, %v169_v34  ;;  %v243_v35 = vmul.f32 %v237_v10, %v237_v10 }
  0x2e   :  { %v246_v36 = vadd.f32 %v241_v25, %v240_v23  ;;  %v244_v38 = vmul.f32 %v238_v24, %v238_v24 }
  0x2f   :  { %v186_v27 = vadd.f32 %v185_v20, %v181_v13  ;;  %v217_v37 = vadd.f32 %v216_v31, %v212_v19  ;;  %v245_v32 = vmul.f32 %v239_v28, %v239_v28 }
  0x30   :  { %v247_v29 = vadd.f32 %v246_v36, %v242_v26 }
  0x31   :  { %189 = vst [vmem:[#allocation13 + $0x8] sm:$0xff] %v186_v27  ;;  %v218_v30 = vadd.f32 %v217_v37, %v213_v11 }
  0x32   :  { %v248_v39 = vadd.f32 %v247_v29, %v243_v35 }
  0x33   :  { %221 = vst [vmem:[#allocation13 + $0x10] sm:$0xff] %v218_v30 }
  0x34   :  { %v249_v40 = vadd.f32 %v248_v39, %v244_v38 }
  0x36   :  { %v250_v33 = vadd.f32 %v249_v40, %v245_v32 }
  0x38   :  { %253 = vst [vmem:[#allocation13 + $0x18] sm:$0xff] %v250_v33 }
  0x39   :  { %266 = dma.vmem_to_hbm [thread:$0]  %s259_s24, 512, %s261_s27, [#allocation4], %s465_s29, %s465_s29, %s466_s30  }
  0x3a   :  { %462 = dma.done.wait [#allocation4], 512  }
  0x3b   :  { %463 = vsyncadd [#allocation4], 4294966784 }
  0x3c   :  { %271 = vsyncpa [#allocation3], 1 }
  0x3d   :  { %272 = vsyncpa [#allocation6], 1 }
  0x3e   :  { %273 = vsyncpa [#allocation9], 1 }
  0x3f   :  { %274 = vsyncpa [#allocation12], 1 }
  0x40   :  { %275 = vsyncpa [#allocation4], 1 }

</bundles_post_ra>
